<compile_context>
chip_gen: v6e
topology: v6e:2x2x1
jax: 0.10.0
libtpu: 0.0.40
codegen_flags: <defaults>
</compile_context>

<pallas_src>
import functools
import math

import jax
import jax.numpy as jnp
from jax import lax
from jax.experimental import pallas as pl
from jax.experimental.pallas import tpu as pltpu


def _conv2d_unrolled_kernel(x_ref, w_ref, o_ref, pad_ref, *,
                            K, stride, padding, H, W, Hout, Cin, bn):
    # x_ref:   (bn, H, W*Cin)          bf16 lane-folded NHWC input (unpadded)
    # w_ref:   (K, Wp*Cin, Wout*Cout)  bf16 kernel-unrolled (block-Toeplitz) weights
    # o_ref:   (bn, Hout, Wout*Cout)   lane-dense output slab
    # pad_ref: (bn, Hp, Wp*Cin)        bf16 VMEM scratch: zero-padded copy of x
    pad_ref[...] = jnp.zeros_like(pad_ref)                       # tiny: (bn,18,72)
    pad_ref[:, padding:padding + H,
            padding * Cin:padding * Cin + W * Cin] = x_ref[...]

    for b in range(bn):                      # static unroll (bn is 1 or 2)
        acc = None
        for kh in range(K):                  # static unroll over row taps
            if stride == 1:
                rows = pad_ref[b, kh:kh + Hout, :]               # (Hout, Wp*Cin)
            else:
                # TODO(synk): strided sublane tap; not exercised on HW here.
                rows = pad_ref[b, pl.ds(kh, Hout, stride=stride), :]
            part = jnp.dot(rows, w_ref[kh],
                           preferred_element_type=jnp.float32)   # (Hout, Wout*Cout)
            acc = part if acc is None else acc + part
        o_ref[b] = acc.astype(o_ref.dtype)


def init_params(key, channels_in, channels_out, kernel_size=3, num_experts=4):
    """Deterministic synthetic parameters (shapes match the PyTorch module)."""
    k1, k2, k3, k4, k5 = jax.random.split(key, 5)
    # routing: Linear(2, 64) -> ReLU -> Linear(64, num_experts) -> Softmax
    W1 = jax.random.normal(k1, (64, 2), jnp.float32) * (1.0 / math.sqrt(2.0))
    b1 = jax.random.normal(k2, (64,), jnp.float32) * 0.1
    W2 = jax.random.normal(k3, (num_experts, 64), jnp.float32) * (1.0 / math.sqrt(64.0))
    b2 = jax.random.normal(k4, (num_experts,), jnp.float32) * 0.1
    fan_in = channels_in * kernel_size * kernel_size
    weight_pool = jax.random.normal(
        k5, (num_experts, channels_out, channels_in, kernel_size, kernel_size),
        jnp.float32) * (1.0 / math.sqrt(fan_in))
    return dict(W1=W1, b1=b1, W2=W2, b2=b2, weight_pool=weight_pool)


def _routing_and_fuse(params, scale, scale2):
    """Routing MLP + expert-weight fusion. Returns fused weight in OIHW."""
    s = jnp.concatenate(
        [jnp.ones((1, 1), jnp.float32) / scale,
         jnp.ones((1, 1), jnp.float32) / scale2], axis=1)            # (1, 2)
    h = jnp.maximum(s @ params["W1"].T + params["b1"], 0.0)          # (1, 64)
    logits = h @ params["W2"].T + params["b2"]                       # (1, E)
    r = jax.nn.softmax(logits, axis=1)[0]                            # (E,)
    fused = jnp.einsum("e,eoihw->oihw", r, params["weight_pool"])    # (Cout,Cin,K,K)
    return fused


def _unroll_weight(fused_oihw, *, Wp, Wout, stride):
    """Kernel-unrolled ("block-Toeplitz") weight.

    Returns B of shape (K, Wp*Cin, Wout*Cout) with
      B[kh, wp*Cin + c, j*Cout + co] = w[co, c, kh, wp - j*stride]   (0 <= . < K)
    so `xpad_row(kh) @ B[kh]` performs the kw/cin contraction for every output
    column j at once — W-padding and W-stride are baked in.
    """
    Cout, Cin, K, _ = fused_oihw.shape
    w_hwio = jnp.transpose(fused_oihw, (2, 3, 1, 0))                 # (K, K, Cin, Cout)
    wp = jnp.arange(Wp)
    j = jnp.arange(Wout)
    kw = wp[:, None] - j[None, :] * stride                           # (Wp, Wout)
    valid = (kw >= 0) & (kw < K)
    kw_c = jnp.clip(kw, 0, K - 1)
    sel = w_hwio[:, kw_c, :, :]                                      # (K, Wp, Wout, Cin, Cout)
    sel = jnp.where(valid[None, :, :, None, None], sel, 0.0)
    B = jnp.transpose(sel, (0, 1, 3, 2, 4)).reshape(K, Wp * Cin, Wout * Cout)
    return B


def scale_aware_conv2d(x_nchw, scale, scale2, params, *, stride=1, padding=1,
                       images_per_block=None):
    """Forward pass matching ScaleAwareConv2d.forward (bias=False), NCHW in/out."""
    weight_pool = params["weight_pool"]
    _, Cout, Cin, K, _ = weight_pool.shape
    N, _, H, W = x_nchw.shape
    out_dtype = x_nchw.dtype

    Hp, Wp = H + 2 * padding, W + 2 * padding
    Hout = (Hp - K) // stride + 1
    Wout = (Wp - K) // stride + 1
    WC = Wout * Cout

    bn = N if images_per_block is None else int(images_per_block)
    if N % bn != 0:
        raise ValueError(f"images_per_block={bn} must divide batch {N}")

    # Routing + expert fusion (tiny, plain JAX), then kernel-unroll the weight.
    fused_oihw = _routing_and_fuse(params, scale, scale2)            # (Cout,Cin,K,K)
    Bw = _unroll_weight(fused_oihw, Wp=Wp, Wout=Wout,
                        stride=stride).astype(jnp.bfloat16)          # (K, Wp*Cin, WC)

    # Single fused pre-pass: NCHW -> lane-folded (N, H, W*Cin) bf16.
    xf = jnp.transpose(x_nchw, (0, 2, 3, 1)).reshape(N, H, W * Cin)
    xf = xf.astype(jnp.bfloat16)

    kernel = functools.partial(
        _conv2d_unrolled_kernel, K=K, stride=stride, padding=padding,
        H=H, W=W, Hout=Hout, Cin=Cin, bn=bn)

    cost = pl.CostEstimate(
        flops=2 * N * K * Hout * (Wp * Cin) * WC,
        transcendentals=0,
        bytes_accessed=(N * H * W * Cin * 2          # bf16 folded input
                        + K * Wp * Cin * WC * 2      # bf16 unrolled weight
                        + N * Hout * WC * 4))        # f32 output slab

    out_slab = pl.pallas_call(
        kernel,
        out_shape=jax.ShapeDtypeStruct((N, Hout, WC), out_dtype),
        grid_spec=pltpu.PrefetchScalarGridSpec(
            num_scalar_prefetch=0,
            grid=(N // bn,),
            in_specs=[
                pl.BlockSpec((bn, H, W * Cin), lambda n: (n, 0, 0)),
                # constant block index -> fetched once across grid steps
                pl.BlockSpec((K, Wp * Cin, WC), lambda n: (0, 0, 0)),
            ],
            out_specs=pl.BlockSpec((bn, Hout, WC), lambda n: (n, 0, 0)),
            scratch_shapes=[pltpu.VMEM((bn, Hp, Wp * Cin), jnp.bfloat16)],
        ),
        compiler_params=pltpu.CompilerParams(dimension_semantics=("parallel",)),
        cost_estimate=cost,
    )(xf, Bw)

    # Small post-pass back to the module's NCHW contract.
    out = out_slab.reshape(N, Hout, Wout, Cout)
    return jnp.transpose(out, (0, 3, 1, 2))


if __name__ == "__main__":
    key = jax.random.PRNGKey(0)
    k_p, k_x = jax.random.split(key)

    # Small shapes consistent with the module: N=2, Cin=4, Cout=8, H=W=16, K=3.
    N, Cin, Cout, H, W = 2, 4, 8, 16, 16
    params = init_params(k_p, Cin, Cout, kernel_size=3, num_experts=4)
    x = jax.random.normal(k_x, (N, Cin, H, W), jnp.float32)
    scale, scale2 = 2.0, 3.0

    # Default: whole batch in one grid step (v5e/v6e single-TC optimum).
    fwd = jax.jit(lambda xx, s1, s2: scale_aware_conv2d(
        xx, s1, s2, params, stride=1, padding=1))
    out = jax.block_until_ready(fwd(x, scale, scale2))
    assert out.shape == (N, Cout, H, W), out.shape

    # Per-image grid step (one image per TensorCore on v7x) must match.
    fwd_b1 = jax.jit(lambda xx, s1, s2: scale_aware_conv2d(
        xx, s1, s2, params, stride=1, padding=1, images_per_block=1))
    out_b1 = jax.block_until_ready(fwd_b1(x, scale, scale2))
    assert jnp.allclose(out, out_b1, rtol=1e-6, atol=1e-6), \
        float(jnp.max(jnp.abs(out - out_b1)))

    fused_oihw = _routing_and_fuse(params, scale, scale2)

    # (1) Tight check against an XLA conv on the same bf16-rounded operands
    #     (same math as the kernel: bf16 operands, f32 accumulation).
    x_bf = x.astype(jnp.bfloat16).astype(jnp.float32)
    w_bf = fused_oihw.astype(jnp.bfloat16).astype(jnp.float32)
    ref_bf = lax.conv_general_dilated(
        x_bf, w_bf, window_strides=(1, 1), padding=[(1, 1), (1, 1)],
        dimension_numbers=("NCHW", "OIHW", "NCHW"),
        precision=lax.Precision.HIGHEST)
    ref_bf = jax.block_until_ready(ref_bf)
    assert jnp.allclose(out, ref_bf, rtol=2e-3, atol=2e-3), \
        float(jnp.max(jnp.abs(out - ref_bf)))

    # (2) Semantic-fidelity check against the full-f32 module reference
    #     (looser tolerance since the kernel feeds bf16 to the MXU).
    ref_f32 = lax.conv_general_dilated(
        x, fused_oihw, window_strides=(1, 1), padding=[(1, 1), (1, 1)],
        dimension_numbers=("NCHW", "OIHW", "NCHW"),
        precision=lax.Precision.HIGHEST)
    ref_f32 = jax.block_until_ready(ref_f32)
    assert jnp.allclose(out, ref_f32, rtol=5e-2, atol=5e-2), \
        float(jnp.max(jnp.abs(out - ref_f32)))

    print("KERNEL_OK")
</pallas_src>

<mosaic_0001>
module attributes {stable_mosaic.version = 11 : i64} {
  func.func @_conv2d_unrolled_kernel(%arg0: i32, %arg1: memref<2x16x64xbf16, #tpu.memory_space<vmem>>, %arg2: memref<3x72x128xbf16, #tpu.memory_space<vmem>>, %arg3: memref<2x16x128xf32, #tpu.memory_space<vmem>>, %arg4: memref<2x18x72xbf16, #tpu.memory_space<vmem>>) attributes {dimension_semantics = [#tpu.dimension_semantics<parallel>], iteration_bounds = array<i64: 1>, scalar_prefetch = 0 : i64, scratch_operands = 1 : i64, tpu.core_type = #tpu.core_type<tc>, window_params = [{transform_indices = @transform_0, window_bounds = array<i64: 2, 16, 64>}, {pipeline_mode = #tpu.pipeline_mode<synchronous>, transform_indices = @transform_1, window_bounds = array<i64: 3, 72, 128>}, {transform_indices = @transform_2, window_bounds = array<i64: 2, 16, 128>}]} {
    %cst = arith.constant 0.000000e+00 : bf16
    %0 = vector.broadcast %cst : bf16 to vector<2x18x72xbf16>
    %c0 = arith.constant 0 : index
    %c0_0 = arith.constant 0 : index
    %c0_1 = arith.constant 0 : index
    %1 = vector.load %arg4[%c0, %c0_0, %c0_1] : memref<2x18x72xbf16, #tpu.memory_space<vmem>>, vector<2x18x72xbf16>
    tpu.vector_store %arg4[%c0, %c0_0, %c0_1], %0 {strides = array<i32>} : memref<2x18x72xbf16, #tpu.memory_space<vmem>>, vector<2x18x72xbf16>,
    %c0_2 = arith.constant 0 : index
    %c0_3 = arith.constant 0 : index
    %c0_4 = arith.constant 0 : index
    %2 = vector.load %arg1[%c0_2, %c0_3, %c0_4] : memref<2x16x64xbf16, #tpu.memory_space<vmem>>, vector<2x16x64xbf16>
    %c0_5 = arith.constant 0 : index
    %c1 = arith.constant 1 : index
    %c4 = arith.constant 4 : index
    %3 = vector.load %arg4[%c0_5, %c1, %c4] : memref<2x18x72xbf16, #tpu.memory_space<vmem>>, vector<2x16x64xbf16>
    tpu.vector_store %arg4[%c0_5, %c1, %c4], %2 {strides = array<i32>} : memref<2x18x72xbf16, #tpu.memory_space<vmem>>, vector<2x16x64xbf16>,
    %c0_6 = arith.constant 0 : index
    %c0_7 = arith.constant 0 : index
    %c0_8 = arith.constant 0 : index
    %4 = vector.load %arg4[%c0_6, %c0_7, %c0_8] : memref<2x18x72xbf16, #tpu.memory_space<vmem>>, vector<1x16x72xbf16>
    %5 = vector.shape_cast %4 : vector<1x16x72xbf16> to vector<16x72xbf16>
    %c0_9 = arith.constant 0 : index
    %c0_10 = arith.constant 0 : index
    %c0_11 = arith.constant 0 : index
    %6 = vector.load %arg2[%c0_9, %c0_10, %c0_11] : memref<3x72x128xbf16, #tpu.memory_space<vmem>>, vector<1x72x128xbf16>
    %7 = vector.shape_cast %6 : vector<1x72x128xbf16> to vector<72x128xbf16>
    %cst_12 = arith.constant dense<0.000000e+00> : vector<16x128xf32>
    %8 = tpu.matmul %5, %7, %cst_12 {dimension_numbers = #tpu.dot_dimension_numbers<[1], [0], [0], [1], [0, 0, 1, 1], [], []>} : vector<16x72xbf16>, vector<72x128xbf16>, vector<16x128xf32> -> vector<16x128xf32>
    %c0_13 = arith.constant 0 : index
    %c1_14 = arith.constant 1 : index
    %c0_15 = arith.constant 0 : index
    %9 = vector.load %arg4[%c0_13, %c1_14, %c0_15] : memref<2x18x72xbf16, #tpu.memory_space<vmem>>, vector<1x16x72xbf16>
    %10 = vector.shape_cast %9 : vector<1x16x72xbf16> to vector<16x72xbf16>
    %c1_16 = arith.constant 1 : index
    %c0_17 = arith.constant 0 : index
    %c0_18 = arith.constant 0 : index
    %11 = vector.load %arg2[%c1_16, %c0_17, %c0_18] : memref<3x72x128xbf16, #tpu.memory_space<vmem>>, vector<1x72x128xbf16>
    %12 = vector.shape_cast %11 : vector<1x72x128xbf16> to vector<72x128xbf16>
    %cst_19 = arith.constant dense<0.000000e+00> : vector<16x128xf32>
    %13 = tpu.matmul %10, %12, %cst_19 {dimension_numbers = #tpu.dot_dimension_numbers<[1], [0], [0], [1], [0, 0, 1, 1], [], []>} : vector<16x72xbf16>, vector<72x128xbf16>, vector<16x128xf32> -> vector<16x128xf32>
    %14 = arith.addf %8, %13 : vector<16x128xf32>
    %c0_20 = arith.constant 0 : index
    %c2 = arith.constant 2 : index
    %c0_21 = arith.constant 0 : index
    %15 = vector.load %arg4[%c0_20, %c2, %c0_21] : memref<2x18x72xbf16, #tpu.memory_space<vmem>>, vector<1x16x72xbf16>
    %16 = vector.shape_cast %15 : vector<1x16x72xbf16> to vector<16x72xbf16>
    %c2_22 = arith.constant 2 : index
    %c0_23 = arith.constant 0 : index
    %c0_24 = arith.constant 0 : index
    %17 = vector.load %arg2[%c2_22, %c0_23, %c0_24] : memref<3x72x128xbf16, #tpu.memory_space<vmem>>, vector<1x72x128xbf16>
    %18 = vector.shape_cast %17 : vector<1x72x128xbf16> to vector<72x128xbf16>
    %cst_25 = arith.constant dense<0.000000e+00> : vector<16x128xf32>
    %19 = tpu.matmul %16, %18, %cst_25 {dimension_numbers = #tpu.dot_dimension_numbers<[1], [0], [0], [1], [0, 0, 1, 1], [], []>} : vector<16x72xbf16>, vector<72x128xbf16>, vector<16x128xf32> -> vector<16x128xf32>
    %20 = arith.addf %14, %19 : vector<16x128xf32>
    %c0_26 = arith.constant 0 : index
    %c0_27 = arith.constant 0 : index
    %c0_28 = arith.constant 0 : index
    %21 = vector.load %arg3[%c0_26, %c0_27, %c0_28] : memref<2x16x128xf32, #tpu.memory_space<vmem>>, vector<1x16x128xf32>
    %22 = vector.shape_cast %21 : vector<1x16x128xf32> to vector<16x128xf32>
    %23 = vector.shape_cast %20 : vector<16x128xf32> to vector<1x16x128xf32>
    tpu.vector_store %arg3[%c0_26, %c0_27, %c0_28], %23 {strides = array<i32>} : memref<2x16x128xf32, #tpu.memory_space<vmem>>, vector<1x16x128xf32>,
    %c1_29 = arith.constant 1 : index
    %c0_30 = arith.constant 0 : index
    %c0_31 = arith.constant 0 : index
    %24 = vector.load %arg4[%c1_29, %c0_30, %c0_31] : memref<2x18x72xbf16, #tpu.memory_space<vmem>>, vector<1x16x72xbf16>
    %25 = vector.shape_cast %24 : vector<1x16x72xbf16> to vector<16x72xbf16>
    %c0_32 = arith.constant 0 : index
    %c0_33 = arith.constant 0 : index
    %c0_34 = arith.constant 0 : index
    %26 = vector.load %arg2[%c0_32, %c0_33, %c0_34] : memref<3x72x128xbf16, #tpu.memory_space<vmem>>, vector<1x72x128xbf16>
    %27 = vector.shape_cast %26 : vector<1x72x128xbf16> to vector<72x128xbf16>
    %cst_35 = arith.constant dense<0.000000e+00> : vector<16x128xf32>
    %28 = tpu.matmul %25, %27, %cst_35 {dimension_numbers = #tpu.dot_dimension_numbers<[1], [0], [0], [1], [0, 0, 1, 1], [], []>} : vector<16x72xbf16>, vector<72x128xbf16>, vector<16x128xf32> -> vector<16x128xf32>
    %c1_36 = arith.constant 1 : index
    %c1_37 = arith.constant 1 : index
    %c0_38 = arith.constant 0 : index
    %29 = vector.load %arg4[%c1_36, %c1_37, %c0_38] : memref<2x18x72xbf16, #tpu.memory_space<vmem>>, vector<1x16x72xbf16>
    %30 = vector.shape_cast %29 : vector<1x16x72xbf16> to vector<16x72xbf16>
    %c1_39 = arith.constant 1 : index
    %c0_40 = arith.constant 0 : index
    %c0_41 = arith.constant 0 : index
    %31 = vector.load %arg2[%c1_39, %c0_40, %c0_41] : memref<3x72x128xbf16, #tpu.memory_space<vmem>>, vector<1x72x128xbf16>
    %32 = vector.shape_cast %31 : vector<1x72x128xbf16> to vector<72x128xbf16>
    %cst_42 = arith.constant dense<0.000000e+00> : vector<16x128xf32>
    %33 = tpu.matmul %30, %32, %cst_42 {dimension_numbers = #tpu.dot_dimension_numbers<[1], [0], [0], [1], [0, 0, 1, 1], [], []>} : vector<16x72xbf16>, vector<72x128xbf16>, vector<16x128xf32> -> vector<16x128xf32>
    %34 = arith.addf %28, %33 : vector<16x128xf32>
    %c1_43 = arith.constant 1 : index
    %c2_44 = arith.constant 2 : index
    %c0_45 = arith.constant 0 : index
    %35 = vector.load %arg4[%c1_43, %c2_44, %c0_45] : memref<2x18x72xbf16, #tpu.memory_space<vmem>>, vector<1x16x72xbf16>
    %36 = vector.shape_cast %35 : vector<1x16x72xbf16> to vector<16x72xbf16>
    %c2_46 = arith.constant 2 : index
    %c0_47 = arith.constant 0 : index
    %c0_48 = arith.constant 0 : index
    %37 = vector.load %arg2[%c2_46, %c0_47, %c0_48] : memref<3x72x128xbf16, #tpu.memory_space<vmem>>, vector<1x72x128xbf16>
    %38 = vector.shape_cast %37 : vector<1x72x128xbf16> to vector<72x128xbf16>
    %cst_49 = arith.constant dense<0.000000e+00> : vector<16x128xf32>
    %39 = tpu.matmul %36, %38, %cst_49 {dimension_numbers = #tpu.dot_dimension_numbers<[1], [0], [0], [1], [0, 0, 1, 1], [], []>} : vector<16x72xbf16>, vector<72x128xbf16>, vector<16x128xf32> -> vector<16x128xf32>
    %40 = arith.addf %34, %39 : vector<16x128xf32>
    %c1_50 = arith.constant 1 : index
    %c0_51 = arith.constant 0 : index
    %c0_52 = arith.constant 0 : index
    %41 = vector.load %arg3[%c1_50, %c0_51, %c0_52] : memref<2x16x128xf32, #tpu.memory_space<vmem>>, vector<1x16x128xf32>
    %42 = vector.shape_cast %41 : vector<1x16x128xf32> to vector<16x128xf32>
    %43 = vector.shape_cast %40 : vector<16x128xf32> to vector<1x16x128xf32>
    tpu.vector_store %arg3[%c1_50, %c0_51, %c0_52], %43 {strides = array<i32>} : memref<2x16x128xf32, #tpu.memory_space<vmem>>, vector<1x16x128xf32>,
    return
  }
  func.func @transform_0(%arg0: i32) -> (i32, i32, i32) {
    %c0_i32 = arith.constant 0 : i32
    %c0_i32_0 = arith.constant 0 : i32
    %c0_i32_1 = arith.constant 0 : i32
    return %arg0, %c0_i32, %c0_i32_0 : i32, i32, i32
  }
  func.func @transform_1(%arg0: i32) -> (i32, i32, i32) {
    %c0_i32 = arith.constant 0 : i32
    %c0_i32_0 = arith.constant 0 : i32
    %c0_i32_1 = arith.constant 0 : i32
    %c0_i32_2 = arith.constant 0 : i32
    return %c0_i32, %c0_i32_0, %c0_i32_1 : i32, i32, i32
  }
  func.func @transform_2(%arg0: i32) -> (i32, i32, i32) {
    %c0_i32 = arith.constant 0 : i32
    %c0_i32_0 = arith.constant 0 : i32
    %c0_i32_1 = arith.constant 0 : i32
    return %arg0, %c0_i32, %c0_i32_0 : i32, i32, i32
  }
}

</mosaic_0001>

<bundles_post_ra>
// kernel: _lambda_.1
= control target key start
LH: loop header
LB: loop body
LE: loop exit
PB: predicated region body
PF: predicated region fallthrough
CT: control target
= control target key end

     0   :  { %vm24_vm0 = vsmask.f32 256  ;;  %vm25_vm1 = vsmask.f32 4368  ;;  %v915_v2 = vmov 0.0   ;;  %vm173_vm2 = vcmask 1043456   ;;  %s1164_s0 = inlined_call_operand.vmem [shape: bf16[2,16,64], index: 0, kind: input, shape index: {}]   ;;  %s1165_s1 = inlined_call_operand.vmem [shape: bf16[3,72,128], index: 1, kind: input, shape index: {}]   ;;  %s1166_s2 = inlined_call_operand.vmem [shape: f32[2,16,128], index: 2, kind: output, shape index: {}]  }
   0x1   :  { %v20_v0 = vld [vmem:[%s1164_s0] sm:$0xf]  ;;  %v21_v1 = vld [vmem:[%s1164_s0 + $0x4] sm:$0xf]  ;;  %805 = vmatprep.subr.bf16.mxu1 %v915_v2  ;;  %791 = vmatprep.subr.bf16.mxu0 %v915_v2  ;;  %v22_v7 = vld [vmem:[%s1164_s0 + $0x8] sm:$0xf] }
   0x2   :  { %v28_v3 = vshrl.u32 %v20_v0, 16  ;;  %v31_v4 = vshll.u32 %v20_v0, 16  ;;  %v36_v5 = vshrl.u32 %v21_v1, 16  ;;  %v39_v6 = vshll.u32 %v21_v1, 16  ;;  %v23_v9 = vld [vmem:[%s1164_s0 + $0xc] sm:$0xf]  ;;  %vm953_vm4 = vmor %vm24_vm0, %vm25_vm1 }
   0x3   :  { %v45_v8 = vshrl.u32 %v22_v7, 16  ;;  %vm12_vm3 = vcmask 584704   ;;  %v48_v12 = vshll.u32 %v22_v7, 16  ;;  %v53_v13 = vshrl.u32 %v23_v9, 16  ;;  %v879_v14 = vld [vmem:[%s1165_s1 + $0x20] ss:$0 sps:$4 sm:$0xff]  }
   0x4   :  { %v30_v10 = vrot.slane %v28_v3, 7  ;;  %v38_v11 = vrot.slane %v36_v5, 7  ;;  %v56_v16 = vshll.u32 %v23_v9, 16  ;;  %v881_v22 = vld [vmem:[%s1165_s1 + $0x44] ss:$0 sps:$4 sm:$0xff]   ;;  %v248_v24 = vsel %vm173_vm2, %v879_v14, 0 }
   0x5   :  { %v47_v15 = vrot.slane %v45_v8, 7  ;;  %v55_v23 = vrot.slane %v53_v13, 7  ;;  %s916_s20 = smov 4   ;;  %806 = vmatpush3.bf16.msra.mxu1 %v248_v24  ;;  %v880_v29 = vld [vmem:[%s1165_s1 + $0x18] sm:$0xff]   ;;  %v917_v30 = vmov 0   ;;  %v175_v31 = vsel %vm173_vm2, %v881_v22, 0 }
   0x6   :  { %v33_v17 = vor.u32 %v31_v4, %v30_v10  ;;  %v34_v18 = vrot.slane %v30_v10, 4  ;;  %v43_v19 = vrot.slane %v38_v11, 4  ;;  %v41_v20 = vor.u32 %v39_v6, %v38_v11  ;;  %13 = vst.msk [vmem:[#allocation2] sm:$0xf] %vm12_vm3, %v917_v30  ;;  %14 = vst.msk [vmem:[#allocation2 + $0x4] sm:$0xf] %vm12_vm3, %v917_v30  ;;  %807 = vmatprep.subr.bf16.mxu1 %v915_v2 }
   0x7   :  { %v50_v25 = vor.u32 %v48_v12, %v47_v15  ;;  %v51_v26 = vrot.slane %v47_v15, 4  ;;  %v58_v28 = vor.u32 %v56_v16, %v55_v23  ;;  %17 = vst.msk [vmem:[#allocation2 + $0xc] sm:$0xf] %vm12_vm3, %v917_v30  ;;  %18 = vst.msk [vmem:[#allocation2 + $0x10] sm:$0xf] %vm12_vm3, %v917_v30  ;;  %vm15_vm5 = vcmask 581632   ;;  %792 = vmatpush3.bf16.msra.mxu0 %v175_v31 }
   0x8   :  { %61 = vrot.lane.b32.xlu0 %v33_v17, %s916_s20  ;;  %65 = vrot.lane.b32.xlu1 %v43_v19, %s916_s20  ;;  %v42_v27 = vsel %vm953_vm4, %v34_v18, %v41_v20  ;;  %16 = vst.msk [vmem:[#allocation2 + $0x8] sm:$0x1] %vm15_vm5, %v917_v30  ;;  %19 = vst.msk [vmem:[#allocation2 + $0x14] sm:$0x1] %vm15_vm5, %v917_v30  ;;  %v883_v32 = vld [vmem:[%s1165_s1 + $0x3c] sm:$0xff]   ;;  %v60_v33 = vrot.slane %v55_v23, 4 }
   0x9   :  { %793 = vmatprep.subr.bf16.mxu0 %v915_v2  ;;  %v59_v34 = vsel %vm953_vm4, %v51_v26, %v58_v28  ;;  %808 = vmatpush3.bf16.msra.mxu1 %v880_v29  ;;  %v882_v35 = vld [vmem:[%s1165_s1 + $0x10] sm:$0xff]   ;;  %vm918_vm6 = vmmov 0   ;;  %v890_v37 = vld [vmem:[%s1165_s1 + $0x44] ss:$0 sps:$4 sm:$0xff]   ;;  %v884_v38 = vld [vmem:[%s1165_s1 + $0x8] sm:$0xff]   ;;  %vm79_vm7 = vcmask 551968  }
   0xa   :  { %815 = vmatprep.mubr.msk.bf16.mxu1 %vm918_vm6, %v915_v2  ;;  %809 = vmatprep.subr.bf16.mxu1 %v915_v2  ;;  %v885_v36 = vld [vmem:[%s1165_s1 + $0x34] sm:$0xff]   ;;  %v460_v39 = vsel %vm173_vm2, %v890_v37, 0  ;;  %v887_v40 = vld [vmem:[%s1165_s1 + $0x2c] sm:$0xff]   ;;  %v894_v41 = vld [vmem:[%s1165_s1 + $0x68] ss:$0 sps:$4 sm:$0xff]   ;;  %vm87_vm9 = vcmask 548896  }
   0xb   :  { %794 = vmatpush3.bf16.msra.mxu0 %v883_v32  ;;  %801 = vmatprep.mubr.msk.bf16.mxu0 %vm918_vm6, %v915_v2  ;;  %v886_v42 = vld [vmem:[%s1165_s1] sm:$0xff]   ;;  %v1015_v43 = vsel %vm173_vm2, %v894_v41, 0  ;;  %v903_v45 = vld [vmem:[%s1165_s1 + $0x68] ss:$0 sps:$4 sm:$0xff]   ;;  %vm80_vm8 = vsmask.f32 7938  ;;  %vm1038_vm11 = vmand %vm87_vm9, %vm24_vm0 }
   0xc   :  { %63 = vrot.lane.b32.xlu0 %v42_v27, %s916_s20  ;;  %67 = vrot.lane.b32.xlu1 %v50_v25, %s916_s20  ;;  %v891_v44 = vld [vmem:[%s1165_s1 + $0x24] sm:$0xff]   ;;  %v1028_v46 = vsel %vm173_vm2, %v903_v45, 0  ;;  %v906_v47 = vld [vmem:[%s1165_s1 + $0x20] ss:$0 sps:$4 sm:$0xff]   ;;  %vm81_vm10 = vmand %vm79_vm7, %vm80_vm8  ;;  %vm169_vm12 = vcmask 588800   ;;  %vm305_vm14 = vcmask 1046528  }
   0xd   :  { %795 = vmatprep.subr.bf16.mxu0 %v915_v2  ;;  %810 = vmatpush3.bf16.msra.mxu1 %v882_v35  ;;  %v1034_v48 = vsel %vm173_vm2, %v906_v47, 0  ;;  %v82_v49 = vld [vmem:[#allocation2] sm:$0xf]  ;;  %vm129_vm13 = vsmask.f32 7424  ;;  %v895_v15 = vld [vmem:[%s1165_s1 + $0x34] sm:$0xff]  }
   0xe   :  { %811 = vmatprep.subr.bf16.mxu1 %v915_v2  ;;  %v92_v56 = vld [vmem:[#allocation2 + $0xc] sm:$0xf]  ;;  %v892_v8 = vld [vmem:[%s1165_s1 + $0x3c] sm:$0xff]   ;;  %v899_v25 = vld [vmem:[%s1165_s1 + $0x24] sm:$0xff]  }
   0xf   :  { %796 = vmatpush3.bf16.msra.mxu0 %v885_v36  ;;  %v89_v51 = vld [vmem:[#allocation2 + $0x8] sm:$0x1]  ;;  %v96_v60 = vld [vmem:[#allocation2 + $0x14] sm:$0x1]  ;;  %v896_v19 = vld [vmem:[%s1165_s1 + $0x60] sm:$0xff]  }
  0x10   :  { %69 = vrot.lane.b32.xlu0 %v59_v34, %s916_s20  ;;  %71 = vrot.lane.b32.xlu1 %v60_v33, %s916_s20  ;;  %v897_v20 = vld [vmem:[%s1165_s1 + $0x2c] sm:$0xff]   ;;  %v898_v24 = vld [vmem:[%s1165_s1 + $0x58] sm:$0xff]  }
  0x11   :  { %797 = vmatprep.subr.bf16.mxu0 %v915_v2  ;;  %812 = vmatpush3.bf16.msra.mxu1 %v884_v38  ;;  %v900_v28 = vld [vmem:[%s1165_s1 + $0x50] sm:$0xff]   ;;  %v904_v32 = vld [vmem:[%s1165_s1 + $0x48] sm:$0xff]   ;;  %v905_v33 = vld [vmem:[%s1165_s1 + $0x60] sm:$0xff]  }
  0x12   :  { %813 = vmatprep.subr.bf16.mxu1 %v915_v2  ;;  %v907_v36 = vld [vmem:[%s1165_s1 + $0x58] sm:$0xff]  }
  0x13   :  { %798 = vmatpush3.bf16.msra.mxu0 %v887_v40  ;;  %v908_v38 = vld [vmem:[%s1165_s1 + $0x18] sm:$0xff]   ;;  %v909_v40 = vld [vmem:[%s1165_s1 + $0x50] sm:$0xff]  }
  0x14   :  { %799 = vmatprep.subr.bf16.mxu0 %v915_v2 }
  0x15   :  { %814 = vmatpush3.bf16.msra.mxu1 %v886_v42  ;;  %v910_v42 = vld [vmem:[%s1165_s1 + $0x10] sm:$0xff]  }
  0x16   :  { %833 = vmatprep.subr.bf16.mxu1 %v915_v2 }
  0x17   :  { %800 = vmatpush3.bf16.msra.mxu0 %v891_v44 }
  0x18   :  { %819 = vmatprep.subr.bf16.mxu0 %v915_v2 }
  0x7a   :  { %v62_v52 = vpop.permute.xlu0 %61  ;;  %v66_v53 = vpop.permute.xlu1 %65 }
  0x7b   :  { %v83_v54 = vsel %vm81_vm10, %v62_v52, %v82_v49  ;;  %v90_v55 = vsel %vm1038_vm11, %v66_v53, %v89_v51 }
  0x7c   :  { %84 = vst [vmem:[#allocation2] sm:$0xf] %v83_v54  ;;  %91 = vst [vmem:[#allocation2 + $0x8] sm:$0x1] %v90_v55 }
  0x7e   :  { %v64_v57 = vpop.permute.xlu0 %63  ;;  %v68_v58 = vpop.permute.xlu1 %67 }
  0x7f   :  { %86 = vst.msk [vmem:[#allocation2 + $0x4] sm:$0xf] %vm79_vm7, %v64_v57  ;;  %v93_v59 = vsel %vm81_vm10, %v68_v58, %v92_v56 }
  0x80   :  { %94 = vst [vmem:[#allocation2 + $0xc] sm:$0xf] %v93_v59 }
  0x82   :  { %v70_v61 = vpop.permute.xlu0 %69  ;;  %v72_v62 = vpop.permute.xlu1 %71 }
  0x83   :  { %95 = vst.msk [vmem:[#allocation2 + $0x10] sm:$0xf] %vm79_vm7, %v70_v61  ;;  %v97_v63 = vsel %vm1038_vm11, %v72_v62, %v96_v60  ;;  %v1048_v0 = vld [vmem:[#allocation2 + $0x8] ss:$0 sps:$4 sm:$0x11]  }
  0x84   :  { %98 = vst [vmem:[#allocation2 + $0x14] sm:$0x1] %v97_v63  ;;  %v99_v1 = vld [vmem:[#allocation2] sm:$0xf]  ;;  %v138_v5 = vshll.u32 %v1048_v0, 16  ;;  %v307_v35 = vrot.slane %v1048_v0, 1 }
  0x85   :  { %v291_v29 = vld [vmem:[#allocation2] sm:$0xe] }
  0x86   :  { %v100_v3 = vld [vmem:[#allocation2 + $0x4] sm:$0xf]  ;;  %v140_v12 = vrot.slane %v138_v5, 1 }
  0x87   :  { %v684_v4 = vcombine.low %v99_v1, %v100_v3  ;;  %v388_v6 = vld [vmem:[#allocation2 + $0xc] sm:$0xf]  ;;  %v707_v31 = vcombine.low %v291_v29, %v100_v3 }
  0x89   :  { %816 = vmatmul.mubr.msk.bf16.vlgmr.msra.gmra.mxu1 %vm169_vm12, %v684_v4  ;;  %v133_v7 = vshll.u32 %v684_v4, 16  ;;  %v131_v10 = vshrl.u32 %v684_v4, 16  ;;  %v306_v34 = vrot.slane %v707_v31, 1 }
  0x8a   :  { %834 = vmatpush3.bf16.msra.mxu1 %v460_v39  ;;  %843 = vmatprep.mubr.msk.bf16.mxu1 %vm918_vm6, %v915_v2  ;;  %v1057_v9 = vld [vmem:[#allocation2 + $0x10] sm:$0xf]  ;;  %v576_v39 = vld [vmem:[#allocation2 + $0xc] sm:$0xe] }
  0x8b   :  { %835 = vmatprep.subr.bf16.mxu1 %v915_v2  ;;  %v135_v11 = vrot.slane %v133_v7, 1  ;;  %v1061_v13 = vcombine.low %v388_v6, %v1057_v9  ;;  %v1066_v16 = vld [vmem:[#allocation2 + $0x14] ss:$0 sps:$4 sm:$0x11]   ;;  %v308_v37 = vsel %vm305_vm14, %v306_v34, %v307_v35  ;;  %v746_v41 = vcombine.low %v576_v39, %v1057_v9 }
  0x8c   :  { %v425_v23 = vshll.u32 %v1066_v16, 16  ;;  %v590_v45 = vrot.slane %v1066_v16, 1 }
  0x8d   :  { %v136_v14 = vor.u32 %v135_v11, %v131_v10  ;;  %v420_v17 = vshll.u32 %v1061_v13, 16  ;;  %v418_v21 = vshrl.u32 %v1061_v13, 16  ;;  %v589_v44 = vrot.slane %v746_v41, 1 }
  0x8e   :  { %836 = vmatpush3.bf16.msra.mxu1 %v892_v8  ;;  %v427_v27 = vrot.slane %v425_v23, 1 }
  0x8f   :  { %v141_v18 = vsel %vm129_vm13, %v136_v14, %v140_v12  ;;  %837 = vmatprep.subr.bf16.mxu1 %v915_v2  ;;  %v422_v22 = vrot.slane %v420_v17, 1  ;;  %v591_v47 = vsel %vm305_vm14, %v589_v44, %v590_v45 }
  0x90   :  { %802 = vmatmul.mubr.msk.bf16.vlgmr.msra.gmra.mxu0 %vm169_vm12, %v141_v18 }
  0x91   :  { %820 = vmatpush3.bf16.msra.mxu0 %v1015_v43  ;;  %829 = vmatprep.mubr.msk.bf16.mxu0 %vm918_vm6, %v915_v2  ;;  %v423_v26 = vor.u32 %v422_v22, %v418_v21  ;;  %v911_v43 = vld [vmem:[%s1165_s1 + $0x48] sm:$0xff]  }
  0x92   :  { %838 = vmatpush3.bf16.msra.mxu1 %v895_v15  ;;  %821 = vmatprep.subr.bf16.mxu0 %v915_v2 }
  0x93   :  { %839 = vmatprep.subr.bf16.mxu1 %v915_v2  ;;  %v428_v30 = vsel %vm129_vm13, %v423_v26, %v427_v27 }
  0x95   :  { %822 = vmatpush3.bf16.msra.mxu0 %v896_v19 }
  0x96   :  { %840 = vmatpush3.bf16.msra.mxu1 %v897_v20  ;;  %823 = vmatprep.subr.bf16.mxu0 %v915_v2 }
  0x97   :  { %841 = vmatprep.subr.bf16.mxu1 %v915_v2 }
  0x99   :  { %824 = vmatpush3.bf16.msra.mxu0 %v898_v24 }
  0x9a   :  { %842 = vmatpush3.bf16.msra.mxu1 %v899_v25  ;;  %825 = vmatprep.subr.bf16.mxu0 %v915_v2 }
  0x9b   :  { %861 = vmatprep.subr.bf16.mxu1 %v915_v2 }
  0x9d   :  { %826 = vmatpush3.bf16.msra.mxu0 %v900_v28  ;;  %844 = vmatmul.mubr.msk.bf16.vlgmr.msra.gmra.mxu1 %vm169_vm12, %v428_v30 }
  0x9e   :  { %862 = vmatpush3.bf16.msra.mxu1 %v1028_v46  ;;  %827 = vmatprep.subr.bf16.mxu0 %v915_v2  ;;  %v912_v46 = vld [vmem:[%s1165_s1 + $0x8] sm:$0xff]  }
  0x9f   :  { %863 = vmatprep.subr.bf16.mxu1 %v915_v2  ;;  %871 = vmatprep.mubr.msk.bf16.mxu1 %vm918_vm6, %v915_v2 }
  0xa1   :  { %828 = vmatpush3.bf16.msra.mxu0 %v904_v32 }
  0xa2   :  { %864 = vmatpush3.bf16.msra.mxu1 %v905_v33  ;;  %847 = vmatprep.subr.bf16.mxu0 %v915_v2 }
  0xa3   :  { %865 = vmatprep.subr.bf16.mxu1 %v915_v2 }
  0xa4   :  { %830 = vmatmul.mubr.msk.bf16.vlgmr.msra.gmra.mxu0 %vm169_vm12, %v308_v37 }
  0xa5   :  { %848 = vmatpush3.bf16.msra.mxu0 %v1034_v48  ;;  %857 = vmatprep.mubr.msk.bf16.mxu0 %vm918_vm6, %v915_v2  ;;  %v914_v48 = vld [vmem:[%s1165_s1] sm:$0xff]  }
  0xa6   :  { %866 = vmatpush3.bf16.msra.mxu1 %v907_v36  ;;  %849 = vmatprep.subr.bf16.mxu0 %v915_v2 }
  0xa7   :  { %867 = vmatprep.subr.bf16.mxu1 %v915_v2 }
  0xa9   :  { %850 = vmatpush3.bf16.msra.mxu0 %v908_v38 }
  0xaa   :  { %868 = vmatpush3.bf16.msra.mxu1 %v909_v40  ;;  %851 = vmatprep.subr.bf16.mxu0 %v915_v2 }
  0xab   :  { %869 = vmatprep.subr.bf16.mxu1 %v915_v2 }
  0xad   :  { %852 = vmatpush3.bf16.msra.mxu0 %v910_v42 }
  0xae   :  { %870 = vmatpush3.bf16.msra.mxu1 %v911_v43  ;;  %853 = vmatprep.subr.bf16.mxu0 %v915_v2 }
  0xb1   :  { %854 = vmatpush3.bf16.msra.mxu0 %v912_v46  ;;  %872 = vmatmul.mubr.msk.bf16.vlgmr.msra.gmra.mxu1 %vm169_vm12, %v591_v47 }
  0xb2   :  { %855 = vmatprep.subr.bf16.mxu0 %v915_v2 }
  0xb5   :  { %856 = vmatpush3.bf16.msra.mxu0 %v914_v48 }
  0xb8   :  { %858 = vmatmul.mubr.msk.bf16.vlgmr.msra.gmra.mxu0 %vm169_vm12, %v1061_v13 }
 0x149   :  { %v284_v49 = vpop.f32.mrf.mxu1 }
 0x14b   :  { %v817_v50 = vpop.f32.mrf.mxu1 }
 0x14d   :  { %v287_v51 = vpop.f32.mrf.mxu1 }
 0x14f   :  { %v818_v52 = vpop.f32.mrf.mxu1 }
 0x150   :  { %v211_v53 = vpop.f32.mrf.mxu0 }
 0x151   :  { %v285_v60 = vadd.f32 %v284_v49, %v211_v53 }
 0x152   :  { %v803_v54 = vpop.f32.mrf.mxu0 }
 0x154   :  { %v214_v55 = vpop.f32.mrf.mxu0 }
 0x155   :  { %v288_v0 = vadd.f32 %v287_v51, %v214_v55 }
 0x156   :  { %v804_v56 = vpop.f32.mrf.mxu0 }
 0x15d   :  { %v496_v57 = vpop.f32.mrf.mxu1 }
 0x15f   :  { %v845_v58 = vpop.f32.mrf.mxu1 }
 0x161   :  { %v499_v59 = vpop.f32.mrf.mxu1 }
 0x163   :  { %v846_v61 = vpop.f32.mrf.mxu1 }
 0x164   :  { %v376_v62 = vpop.f32.mrf.mxu0 }
 0x165   :  { %v383_v63 = vadd.f32 %v376_v62, %v285_v60 }
 0x166   :  { %v831_v2 = vpop.f32.mrf.mxu0 }
 0x167   :  { %385 = vst [vmem:[%s1166_s2] sm:$0xff] %v383_v63 }
 0x168   :  { %v379_v1 = vpop.f32.mrf.mxu0 }
 0x169   :  { %v384_v3 = vadd.f32 %v379_v1, %v288_v0 }
 0x16a   :  { %v832_v4 = vpop.f32.mrf.mxu0 }
 0x16b   :  { %386 = vst [vmem:[%s1166_s2 + $0x8] sm:$0xff] %v384_v3 }
 0x171   :  { %v659_v5 = vpop.f32.mrf.mxu1 }
 0x173   :  { %v873_v6 = vpop.f32.mrf.mxu1 }
 0x175   :  { %v662_v7 = vpop.f32.mrf.mxu1 }
 0x177   :  { %v874_v8 = vpop.f32.mrf.mxu1 }
 0x178   :  { %v569_v9 = vpop.f32.mrf.mxu0 }
 0x179   :  { %v570_v10 = vadd.f32 %v569_v9, %v496_v57 }
 0x17a   :  { %v859_v11 = vpop.f32.mrf.mxu0 }
 0x17b   :  { %v666_v12 = vadd.f32 %v659_v5, %v570_v10 }
 0x17c   :  { %v572_v13 = vpop.f32.mrf.mxu0 }
 0x17d   :  { %753 = vst [vmem:[%s1166_s2 + $0x10] sm:$0xff] %v666_v12  ;;  %v573_v14 = vadd.f32 %v572_v13, %v499_v59 }
 0x17e   :  { %v860_v15 = vpop.f32.mrf.mxu0 }
 0x17f   :  { %v667_v16 = vadd.f32 %v662_v7, %v573_v14 }
 0x181   :  { %754 = vst [vmem:[%s1166_s2 + $0x18] sm:$0xff] %v667_v16 }

</bundles_post_ra>
